<compile_context>
chip_gen: v7x
topology: tpu7x:2x2x1
jax: 0.10.0
libtpu: 0.0.40
codegen_flags: <defaults>
</compile_context>

<pallas_src>
import math
from functools import partial

import jax
import jax.numpy as jnp
from jax import lax
from jax.experimental import pallas as pl
from jax.experimental.pallas import tpu as pltpu


def _round_up(x, m):
    return (x + m - 1) // m * m


def _choose_tm(M, tm_max=1024):
    """Row-tile size: multiple of 8, <= tm_max, >= 2 grid steps when possible."""
    tm = min(tm_max, _round_up(max(M, 1), 8))
    if M > 8 and pl.cdiv(M, tm) < 2:
        # keep both v7x TensorCores busy in the parallel pass
        tm = _round_up(pl.cdiv(M, 2), 8)
    return tm


# ----------------------------- Pallas kernels -----------------------------

def _cbn_stats_kernel(x_ref, g_ref, b_ref, scale_ref, shift_ref,
                      sum_ref, sq_ref, *, m_total, eps):
    """Pass 1: global per-column (channel, part) statistics -> scale / shift."""
    i = pl.program_id(0)

    @pl.when(i == 0)
    def _():
        sum_ref[...] = jnp.zeros_like(sum_ref)
        sq_ref[...] = jnp.zeros_like(sq_ref)

    x = x_ref[...].astype(jnp.float32)
    # Mask rows past the true M extent (ragged last tile) so the global sums
    # stay exact — no HBM padding copies needed.
    row = i * x.shape[0] + lax.broadcasted_iota(jnp.int32, x.shape, 0)
    x = jnp.where(row < m_total, x, 0.0)
    sum_ref[...] += jnp.sum(x, axis=0, keepdims=True)
    sq_ref[...] += jnp.sum(x * x, axis=0, keepdims=True)

    @pl.when(i == pl.num_programs(0) - 1)
    def _():
        inv_m = 1.0 / m_total
        mean = sum_ref[...] * inv_m
        var = jnp.maximum(sq_ref[...] * inv_m - mean * mean, 0.0)  # biased var
        scale = g_ref[...].astype(jnp.float32) * lax.rsqrt(var + eps)
        scale_ref[...] = scale
        shift_ref[...] = b_ref[...].astype(jnp.float32) - mean * scale


def _cbn_apply_kernel(x_ref, scale_ref, shift_ref, y_ref):
    """Pass 2: y = x * scale + shift, per (tm, 2C) tile."""
    x = x_ref[...].astype(jnp.float32)
    y_ref[...] = (x * scale_ref[...] + shift_ref[...]).astype(y_ref.dtype)


# ----------------------------- wrapper -----------------------------

def cbatchnorm2d_forward(x, gamma_r, beta_r, gamma_i, beta_i, *, eps=1e-5,
                         tm_max=1024, vmem_limit_bytes=32 * 1024 * 1024):
    """Train-mode complex BatchNorm2d.  x: (N, C, H, W, 2) -> same shape."""
    N, C, H, W, two = x.shape
    assert two == 2
    M = N * H * W
    C2 = 2 * C

    # (N,C,H,W,2) -> (M, 2C): columns interleaved as (channel, part).  This is
    # the only layout glue; real+imag are processed by the same lane-dense
    # kernels instead of two narrow calls.
    x2 = x.transpose(0, 2, 3, 1, 4).reshape(M, C2)
    g2 = jnp.stack([gamma_r, gamma_i], axis=-1).reshape(1, C2).astype(jnp.float32)
    b2 = jnp.stack([beta_r, beta_i], axis=-1).reshape(1, C2).astype(jnp.float32)

    tm = _choose_tm(M, tm_max)
    grid = (pl.cdiv(M, tm),)

    # ---- pass 1: global statistics -> per-column scale / shift ----
    scale, shift = pl.pallas_call(
        partial(_cbn_stats_kernel, m_total=M, eps=eps),
        out_shape=(jax.ShapeDtypeStruct((1, C2), jnp.float32),
                   jax.ShapeDtypeStruct((1, C2), jnp.float32)),
        grid=grid,
        in_specs=[
            pl.BlockSpec((tm, C2), lambda i: (i, 0)),
            pl.BlockSpec((1, C2), lambda i: (0, 0)),
            pl.BlockSpec((1, C2), lambda i: (0, 0)),
        ],
        out_specs=(pl.BlockSpec((1, C2), lambda i: (0, 0)),
                   pl.BlockSpec((1, C2), lambda i: (0, 0))),
        scratch_shapes=[pltpu.VMEM((1, C2), jnp.float32),
                        pltpu.VMEM((1, C2), jnp.float32)],
        compiler_params=pltpu.CompilerParams(
            dimension_semantics=("arbitrary",),
            vmem_limit_bytes=vmem_limit_bytes),
    )(x2, g2, b2)

    # ---- pass 2: normalize, tiled + parallel over M ----
    itemsize = jnp.dtype(x.dtype).itemsize
    cost = pl.CostEstimate(
        flops=2 * M * C2,
        transcendentals=0,
        bytes_accessed=2 * M * C2 * itemsize + 2 * C2 * 4 * 2)
    y2 = pl.pallas_call(
        _cbn_apply_kernel,
        out_shape=jax.ShapeDtypeStruct((M, C2), x.dtype),
        grid=grid,
        in_specs=[
            pl.BlockSpec((tm, C2), lambda i: (i, 0)),
            pl.BlockSpec((1, C2), lambda i: (0, 0)),
            pl.BlockSpec((1, C2), lambda i: (0, 0)),
        ],
        out_specs=pl.BlockSpec((tm, C2), lambda i: (i, 0)),
        compiler_params=pltpu.CompilerParams(
            dimension_semantics=("parallel",),
            vmem_limit_bytes=vmem_limit_bytes),
        cost_estimate=cost,
    )(x2, scale, shift)

    return y2.reshape(N, H, W, C, 2).transpose(0, 3, 1, 2, 4)


# ----------------------------- module mirror -----------------------------

class CBatchNorm2d:
    """JAX/Pallas mirror of the PyTorch CBatchNorm2d (train-mode forward)."""

    def __init__(self, num_features, eps=1e-5, momentum=0.1, affine=True,
                 track_running_stats=True):
        self.num_features = num_features
        self.eps = eps
        self.momentum = momentum
        self.affine = affine
        self.track_running_stats = track_running_stats
        # TODO(synk): running_mean / running_var momentum updates are a
        # training-time buffer side effect; the train-mode forward output does
        # not depend on them, so they are not materialized here.
        C = num_features
        self.gamma_r = jnp.ones((C,), jnp.float32)
        self.beta_r = jnp.zeros((C,), jnp.float32)
        self.gamma_i = jnp.ones((C,), jnp.float32)
        self.beta_i = jnp.zeros((C,), jnp.float32)

    def __call__(self, x):
        return cbatchnorm2d_forward(x, self.gamma_r, self.beta_r,
                                    self.gamma_i, self.beta_i, eps=self.eps)


# Pure-JAX reference (matches PyTorch nn.BatchNorm2d train-mode numerics).
def cbatchnorm2d_reference(x, gamma_r, beta_r, gamma_i, beta_i, eps=1e-5):
    def bn(u, g, b):
        mean = jnp.mean(u, axis=(0, 2, 3), keepdims=True)
        var = jnp.mean((u - mean) ** 2, axis=(0, 2, 3), keepdims=True)
        return ((u - mean) * lax.rsqrt(var + eps) * g.reshape(1, -1, 1, 1)
                + b.reshape(1, -1, 1, 1))

    return jnp.stack([bn(x[..., 0], gamma_r, beta_r),
                      bn(x[..., 1], gamma_i, beta_i)], axis=-1)


# ----------------------------- demo -----------------------------

if __name__ == "__main__":
    key = jax.random.PRNGKey(0)
    kx, kg1, kb1, kg2, kb2 = jax.random.split(key, 5)

    # Channel count matches how the module is actually used in DCUnet (64
    # features -> 2C = 128 lanes, fully lane-dense blocks).
    N, C, H, W = 2, 64, 16, 16
    x = jax.random.normal(kx, (N, C, H, W, 2), jnp.float32)

    bn = CBatchNorm2d(num_features=C)
    # Non-trivial affine params so the affine path is exercised.
    bn.gamma_r = 1.0 + 0.1 * jax.random.normal(kg1, (C,), jnp.float32)
    bn.beta_r = 0.1 * jax.random.normal(kb1, (C,), jnp.float32)
    bn.gamma_i = 1.0 + 0.1 * jax.random.normal(kg2, (C,), jnp.float32)
    bn.beta_i = 0.1 * jax.random.normal(kb2, (C,), jnp.float32)

    fwd = jax.jit(bn.__call__)
    out = fwd(x)
    jax.block_until_ready(out)

    assert out.shape == (N, C, H, W, 2)
    assert bool(jnp.all(jnp.isfinite(out)))
    ref = cbatchnorm2d_reference(x, bn.gamma_r, bn.beta_r, bn.gamma_i, bn.beta_i,
                                 eps=bn.eps)
    assert bool(jnp.allclose(out, ref, atol=1e-3, rtol=1e-3))
    print("KERNEL_OK")
</pallas_src>

<mosaic_0001>
module attributes {stable_mosaic.version = 11 : i64} {
  func.func @_cbn_stats_kernel(%arg0: i32, %arg1: memref<256x128xf32, #tpu.memory_space<vmem>>, %arg2: memref<1x128xf32, #tpu.memory_space<vmem>>, %arg3: memref<1x128xf32, #tpu.memory_space<vmem>>, %arg4: memref<1x128xf32, #tpu.memory_space<vmem>>, %arg5: memref<1x128xf32, #tpu.memory_space<vmem>>, %arg6: memref<1x128xf32, #tpu.memory_space<vmem>>, %arg7: memref<1x128xf32, #tpu.memory_space<vmem>>) attributes {dimension_semantics = [#tpu.dimension_semantics<arbitrary>], iteration_bounds = array<i64: 2>, scalar_prefetch = 0 : i64, scratch_operands = 2 : i64, tpu.core_type = #tpu.core_type<tc>, window_params = [{transform_indices = @transform_0, window_bounds = array<i64: 256, 128>}, {pipeline_mode = #tpu.pipeline_mode<synchronous>, transform_indices = @transform_1, window_bounds = array<i64: 1, 128>}, {pipeline_mode = #tpu.pipeline_mode<synchronous>, transform_indices = @transform_2, window_bounds = array<i64: 1, 128>}, {pipeline_mode = #tpu.pipeline_mode<synchronous>, transform_indices = @transform_3, window_bounds = array<i64: 1, 128>}, {pipeline_mode = #tpu.pipeline_mode<synchronous>, transform_indices = @transform_4, window_bounds = array<i64: 1, 128>}]} {
    %c0_i32 = arith.constant 0 : i32
    %0 = arith.cmpi eq, %arg0, %c0_i32 : i32
    %1 = arith.extui %0 : i1 to i32
    %c0_i32_0 = arith.constant 0 : i32
    %2 = arith.cmpi ne, %1, %c0_i32_0 : i32
    scf.if %2 {
      %cst_13 = arith.constant 0.000000e+00 : f32
      %26 = vector.broadcast %cst_13 : f32 to vector<1x128xf32>
      %c0_14 = arith.constant 0 : index
      %c0_15 = arith.constant 0 : index
      %27 = vector.load %arg6[%c0_14, %c0_15] : memref<1x128xf32, #tpu.memory_space<vmem>>, vector<1x128xf32>
      tpu.vector_store %arg6[%c0_14, %c0_15], %26 {strides = array<i32>} : memref<1x128xf32, #tpu.memory_space<vmem>>, vector<1x128xf32>,
      %cst_16 = arith.constant 0.000000e+00 : f32
      %28 = vector.broadcast %cst_16 : f32 to vector<1x128xf32>
      %c0_17 = arith.constant 0 : index
      %c0_18 = arith.constant 0 : index
      %29 = vector.load %arg7[%c0_17, %c0_18] : memref<1x128xf32, #tpu.memory_space<vmem>>, vector<1x128xf32>
      tpu.vector_store %arg7[%c0_17, %c0_18], %28 {strides = array<i32>} : memref<1x128xf32, #tpu.memory_space<vmem>>, vector<1x128xf32>,
    } else {
    }
    %c0 = arith.constant 0 : index
    %c0_1 = arith.constant 0 : index
    %3 = vector.load %arg1[%c0, %c0_1] : memref<256x128xf32, #tpu.memory_space<vmem>>, vector<256x128xf32>
    %c256_i32 = arith.constant 256 : i32
    %4 = arith.muli %arg0, %c256_i32 : i32
    %5 = tpu.iota {dimensions = array<i32: 0>} : vector<256x128xi32>
    %6 = vector.broadcast %4 : i32 to vector<256x128xi32>
    %7 = arith.addi %6, %5 : vector<256x128xi32>
    %c512_i32 = arith.constant 512 : i32
    %8 = vector.broadcast %c512_i32 : i32 to vector<256x128xi32>
    %9 = arith.cmpi slt, %7, %8 : vector<256x128xi32>
    %cst = arith.constant 0.000000e+00 : f32
    %10 = vector.broadcast %cst : f32 to vector<256x128xf32>
    %11 = arith.select %9, %3, %10 : vector<256x128xi1>, vector<256x128xf32>
    %c0_2 = arith.constant 0 : index
    %c0_3 = arith.constant 0 : index
    %12 = vector.load %arg6[%c0_2, %c0_3] : memref<1x128xf32, #tpu.memory_space<vmem>>, vector<1x128xf32>
    %cst_4 = arith.constant dense<0.000000e+00> : vector<128xf32>
    %13 = vector.multi_reduction <add>, %11, %cst_4 [0] : vector<256x128xf32> to vector<128xf32>
    %14 = vector.shape_cast %13 : vector<128xf32> to vector<1x128xf32>
    %15 = arith.addf %12, %14 : vector<1x128xf32>
    %c0_5 = arith.constant 0 : index
    %c0_6 = arith.constant 0 : index
    %16 = vector.load %arg6[%c0_5, %c0_6] : memref<1x128xf32, #tpu.memory_space<vmem>>, vector<1x128xf32>
    tpu.vector_store %arg6[%c0_5, %c0_6], %15 {strides = array<i32>} : memref<1x128xf32, #tpu.memory_space<vmem>>, vector<1x128xf32>,
    %c0_7 = arith.constant 0 : index
    %c0_8 = arith.constant 0 : index
    %17 = vector.load %arg7[%c0_7, %c0_8] : memref<1x128xf32, #tpu.memory_space<vmem>>, vector<1x128xf32>
    %18 = arith.mulf %11, %11 : vector<256x128xf32>
    %cst_9 = arith.constant dense<0.000000e+00> : vector<128xf32>
    %19 = vector.multi_reduction <add>, %18, %cst_9 [0] : vector<256x128xf32> to vector<128xf32>
    %20 = vector.shape_cast %19 : vector<128xf32> to vector<1x128xf32>
    %21 = arith.addf %17, %20 : vector<1x128xf32>
    %c0_10 = arith.constant 0 : index
    %c0_11 = arith.constant 0 : index
    %22 = vector.load %arg7[%c0_10, %c0_11] : memref<1x128xf32, #tpu.memory_space<vmem>>, vector<1x128xf32>
    tpu.vector_store %arg7[%c0_10, %c0_11], %21 {strides = array<i32>} : memref<1x128xf32, #tpu.memory_space<vmem>>, vector<1x128xf32>,
    %c1_i32 = arith.constant 1 : i32
    %23 = arith.cmpi eq, %arg0, %c1_i32 : i32
    %24 = arith.extui %23 : i1 to i32
    %c0_i32_12 = arith.constant 0 : i32
    %25 = arith.cmpi ne, %24, %c0_i32_12 : i32
    scf.if %25 {
      %c0_13 = arith.constant 0 : index
      %c0_14 = arith.constant 0 : index
      %26 = vector.load %arg6[%c0_13, %c0_14] : memref<1x128xf32, #tpu.memory_space<vmem>>, vector<1x128xf32>
      %cst_15 = arith.constant 0.001953125 : f32
      %27 = vector.broadcast %cst_15 : f32 to vector<1x128xf32>
      %28 = arith.mulf %26, %27 : vector<1x128xf32>
      %c0_16 = arith.constant 0 : index
      %c0_17 = arith.constant 0 : index
      %29 = vector.load %arg7[%c0_16, %c0_17] : memref<1x128xf32, #tpu.memory_space<vmem>>, vector<1x128xf32>
      %cst_18 = arith.constant 0.001953125 : f32
      %30 = vector.broadcast %cst_18 : f32 to vector<1x128xf32>
      %31 = arith.mulf %29, %30 : vector<1x128xf32>
      %32 = arith.mulf %28, %28 : vector<1x128xf32>
      %33 = arith.subf %31, %32 : vector<1x128xf32>
      %cst_19 = arith.constant 0.000000e+00 : f32
      %34 = vector.broadcast %cst_19 : f32 to vector<1x128xf32>
      %35 = arith.maximumf %33, %34 : vector<1x128xf32>
      %c0_20 = arith.constant 0 : index
      %c0_21 = arith.constant 0 : index
      %36 = vector.load %arg2[%c0_20, %c0_21] : memref<1x128xf32, #tpu.memory_space<vmem>>, vector<1x128xf32>
      %cst_22 = arith.constant 9.99999974E-6 : f32
      %37 = vector.broadcast %cst_22 : f32 to vector<1x128xf32>
      %38 = arith.addf %35, %37 : vector<1x128xf32>
      %39 = math.rsqrt %38 : vector<1x128xf32>
      %40 = arith.mulf %36, %39 : vector<1x128xf32>
      %c0_23 = arith.constant 0 : index
      %c0_24 = arith.constant 0 : index
      %41 = vector.load %arg4[%c0_23, %c0_24] : memref<1x128xf32, #tpu.memory_space<vmem>>, vector<1x128xf32>
      tpu.vector_store %arg4[%c0_23, %c0_24], %40 {strides = array<i32>} : memref<1x128xf32, #tpu.memory_space<vmem>>, vector<1x128xf32>,
      %c0_25 = arith.constant 0 : index
      %c0_26 = arith.constant 0 : index
      %42 = vector.load %arg3[%c0_25, %c0_26] : memref<1x128xf32, #tpu.memory_space<vmem>>, vector<1x128xf32>
      %43 = arith.mulf %28, %40 : vector<1x128xf32>
      %44 = arith.subf %42, %43 : vector<1x128xf32>
      %c0_27 = arith.constant 0 : index
      %c0_28 = arith.constant 0 : index
      %45 = vector.load %arg5[%c0_27, %c0_28] : memref<1x128xf32, #tpu.memory_space<vmem>>, vector<1x128xf32>
      tpu.vector_store %arg5[%c0_27, %c0_28], %44 {strides = array<i32>} : memref<1x128xf32, #tpu.memory_space<vmem>>, vector<1x128xf32>,
    } else {
    }
    return
  }
  func.func @transform_0(%arg0: i32) -> (i32, i32) {
    %c0_i32 = arith.constant 0 : i32
    %c0_i32_0 = arith.constant 0 : i32
    return %arg0, %c0_i32 : i32, i32
  }
  func.func @transform_1(%arg0: i32) -> (i32, i32) {
    %c0_i32 = arith.constant 0 : i32
    %c0_i32_0 = arith.constant 0 : i32
    %c0_i32_1 = arith.constant 0 : i32
    return %c0_i32, %c0_i32_0 : i32, i32
  }
  func.func @transform_2(%arg0: i32) -> (i32, i32) {
    %c0_i32 = arith.constant 0 : i32
    %c0_i32_0 = arith.constant 0 : i32
    %c0_i32_1 = arith.constant 0 : i32
    return %c0_i32, %c0_i32_0 : i32, i32
  }
  func.func @transform_3(%arg0: i32) -> (i32, i32) {
    %c0_i32 = arith.constant 0 : i32
    %c0_i32_0 = arith.constant 0 : i32
    %c0_i32_1 = arith.constant 0 : i32
    return %c0_i32, %c0_i32_0 : i32, i32
  }
  func.func @transform_4(%arg0: i32) -> (i32, i32) {
    %c0_i32 = arith.constant 0 : i32
    %c0_i32_0 = arith.constant 0 : i32
    %c0_i32_1 = arith.constant 0 : i32
    return %c0_i32, %c0_i32_0 : i32, i32
  }
}

module attributes {stable_mosaic.version = 11 : i64} {
  func.func @_cbn_apply_kernel(%arg0: i32, %arg1: memref<256x128xf32, #tpu.memory_space<vmem>>, %arg2: memref<1x128xf32, #tpu.memory_space<vmem>>, %arg3: memref<1x128xf32, #tpu.memory_space<vmem>>, %arg4: memref<256x128xf32, #tpu.memory_space<vmem>>) attributes {dimension_semantics = [#tpu.dimension_semantics<parallel>], iteration_bounds = array<i64: 2>, scalar_prefetch = 0 : i64, scratch_operands = 0 : i64, tpu.core_type = #tpu.core_type<tc>, window_params = [{transform_indices = @transform_0, window_bounds = array<i64: 256, 128>}, {pipeline_mode = #tpu.pipeline_mode<synchronous>, transform_indices = @transform_1, window_bounds = array<i64: 1, 128>}, {pipeline_mode = #tpu.pipeline_mode<synchronous>, transform_indices = @transform_2, window_bounds = array<i64: 1, 128>}, {transform_indices = @transform_3, window_bounds = array<i64: 256, 128>}]} {
    %c0 = arith.constant 0 : index
    %c0_0 = arith.constant 0 : index
    %0 = vector.load %arg1[%c0, %c0_0] : memref<256x128xf32, #tpu.memory_space<vmem>>, vector<256x128xf32>
    %c0_1 = arith.constant 0 : index
    %c0_2 = arith.constant 0 : index
    %1 = vector.load %arg2[%c0_1, %c0_2] : memref<1x128xf32, #tpu.memory_space<vmem>>, vector<1x128xf32>
    %2 = vector.broadcast %1 : vector<1x128xf32> to vector<256x128xf32>
    %3 = arith.mulf %0, %2 : vector<256x128xf32>
    %c0_3 = arith.constant 0 : index
    %c0_4 = arith.constant 0 : index
    %4 = vector.load %arg3[%c0_3, %c0_4] : memref<1x128xf32, #tpu.memory_space<vmem>>, vector<1x128xf32>
    %5 = vector.broadcast %4 : vector<1x128xf32> to vector<256x128xf32>
    %6 = arith.addf %3, %5 : vector<256x128xf32>
    %c0_5 = arith.constant 0 : index
    %c0_6 = arith.constant 0 : index
    %7 = vector.load %arg4[%c0_5, %c0_6] : memref<256x128xf32, #tpu.memory_space<vmem>>, vector<256x128xf32>
    tpu.vector_store %arg4[%c0_5, %c0_6], %6 {strides = array<i32>} : memref<256x128xf32, #tpu.memory_space<vmem>>, vector<256x128xf32>,
    return
  }
  func.func @transform_0(%arg0: i32) -> (i32, i32) {
    %c0_i32 = arith.constant 0 : i32
    %c0_i32_0 = arith.constant 0 : i32
    return %arg0, %c0_i32 : i32, i32
  }
  func.func @transform_1(%arg0: i32) -> (i32, i32) {
    %c0_i32 = arith.constant 0 : i32
    %c0_i32_0 = arith.constant 0 : i32
    %c0_i32_1 = arith.constant 0 : i32
    return %c0_i32, %c0_i32_0 : i32, i32
  }
  func.func @transform_2(%arg0: i32) -> (i32, i32) {
    %c0_i32 = arith.constant 0 : i32
    %c0_i32_0 = arith.constant 0 : i32
    %c0_i32_1 = arith.constant 0 : i32
    return %c0_i32, %c0_i32_0 : i32, i32
  }
  func.func @transform_3(%arg0: i32) -> (i32, i32) {
    %c0_i32 = arith.constant 0 : i32
    %c0_i32_0 = arith.constant 0 : i32
    return %arg0, %c0_i32 : i32, i32
  }
}

</mosaic_0001>

<bundles_post_ra>
// kernel: a_call__.2
= control target key start
LH: loop header
LB: loop body
LE: loop exit
PB: predicated region body
PF: predicated region fallthrough
CT: control target
= control target key end

     0   :  { %s574_s15 = smov 0   ;;  %s708_s0 = inlined_call_operand.vmem [shape: f32[512,128], index: 0, kind: input, shape index: {}]   ;;  %s709_s1 = inlined_call_operand.vmem [shape: f32[1,128], index: 1, kind: input, shape index: {}]   ;;  %s710_s2 = inlined_call_operand.vmem [shape: f32[1,128], index: 2, kind: input, shape index: {}]   ;;  %s711_s3 = inlined_call_operand.vmem [shape: f32[1,128], index: 3, kind: output, shape index: {0}]   ;;  %s712_s4 = inlined_call_operand.vmem [shape: f32[1,128], index: 4, kind: output, shape index: {1}]  }
   0x1 LB: > { %s580_s16 = sadd.s32 4294967295, %s546_s15   ;;  %p521_p0 = scmp.ge.s32.totalorder %s546_s15, 1  ;;  %s546_s15 = sphi %s574_s15, %s15_s15  }
   0x2   : > { %p156_p1 = scmp.lt.s32.totalorder %s546_s15, 3 }
   0x4   : > { %p157_p2 = pnand %p521_p0, %p156_p1 }
   0x5   : > { %s522_s17 = sshll.u32 (!%p157_p2), %s580_s16, 5  ;;  %p524_p4 = scmp.ne.s32.totalorder (!%p157_p2), %s580_s16, 0 }
   0x6   : > { %160 = sbr.rel (%p157_p2) target bundleno = 144 (0x90), region = 32  ;;  %p178_p3 = scmp.lt.s32.totalorder (!%p157_p2), %s522_s17, 63 }
   0xd   : > { %s714_s17 = smov (!%p178_p3, %s522_s17), 63  ;;  %186 = sbr.rel (%p524_p4) target bundleno = 20 (0x14), region = 36 }
   0xe   : > { %s523_s18 = sshll.u32 %s714_s17, 3  ;;  %v548_v0 = vmov (!%p524_p4), 0.0  }
   0xf   : > { %s588_s21 = scalar_lea.vmem %s708_s0, %s523_s18  ;;  %187 = vst [vmem:[#allocation2] sm:$0x1] (!%p524_p4), %v548_v0  ;;  %188 = vst [vmem:[#allocation3] sm:$0x1] (!%p524_p4), %v548_v0 }
  0x14 PF: > { %v222_v1 = vlaneseq  ;;  %s525_s22 = sshll.u32 %s580_s16, 8  ;;  %v189_v11 = vld [vmem:[%s588_s21] sm:$0xff]  ;;  %v190_v12 = vld [vmem:[%s588_s21 + $0x8] sm:$0xff]  ;;  %v191_v15 = vld [vmem:[%s588_s21 + $0x10] sm:$0xff]  ;;  %p526_p5 = scmp.ne.s32.totalorder %s580_s16, 1 }
  0x15   : > { %v595_v4 = vstv %s525_s22  ;;  %v192_v20 = vld [vmem:[%s588_s21 + $0x18] sm:$0xff]  ;;  %v193_v25 = vld [vmem:[%s588_s21 + $0x20] sm:$0xff]  ;;  %v194_v30 = vld [vmem:[%s588_s21 + $0x28] sm:$0xff] }
  0x16   : > { %v591_v2 = vshrl.u32 %v222_v1, 7  ;;  %v195_v37 = vld [vmem:[%s588_s21 + $0x30] sm:$0xff]  ;;  %v196_v43 = vld [vmem:[%s588_s21 + $0x38] sm:$0xff]  ;;  %v197_v50 = vld [vmem:[%s588_s21 + $0x40] sm:$0xff] }
  0x17   : > { %v198_v57 = vld [vmem:[%s588_s21 + $0x48] sm:$0xff]  ;;  %v199_v0 = vld [vmem:[%s588_s21 + $0x50] sm:$0xff] }
  0x18   : > { %v224_v3 = vadd.s32 8, %v591_v2  ;;  %v225_v5 = vadd.s32 16, %v591_v2  ;;  %v226_v6 = vadd.s32 24, %v591_v2  ;;  %v256_v7 = vadd.s32 %v595_v4, %v591_v2 }
  0x19   : > { %v227_v9 = vadd.s32 32, %v591_v2  ;;  %v228_v13 = vadd.s32 40, %v591_v2  ;;  %v229_v16 = vadd.s32 48, %v591_v2  ;;  %v230_v21 = vadd.s32 56, %v591_v2 }
  0x1a   : > { %v257_v8 = vadd.s32 %v595_v4, %v224_v3  ;;  %v258_v10 = vadd.s32 %v595_v4, %v225_v5  ;;  %v259_v14 = vadd.s32 %v595_v4, %v226_v6  ;;  %vm288_vm0 = vcmp.lt.s32.totalorder %v256_v7, 512 }
  0x1b   : > { %v260_v17 = vadd.s32 %v595_v4, %v227_v9  ;;  %v320_v18 = vsel %vm288_vm0, %v189_v11, 0.0  ;;  %v261_v22 = vadd.s32 %v595_v4, %v228_v13  ;;  %v231_v26 = vadd.s32 64, %v591_v2  ;;  %v200_v9 = vld [vmem:[%s588_s21 + $0x58] sm:$0xff] }
  0x1c   : > { %vm289_vm1 = vcmp.lt.s32.totalorder %v257_v8, 512  ;;  %vm290_vm2 = vcmp.lt.s32.totalorder %v258_v10, 512  ;;  %vm291_vm3 = vcmp.lt.s32.totalorder %v259_v14, 512  ;;  %v262_v27 = vadd.s32 %v595_v4, %v229_v16  ;;  %v201_v16 = vld [vmem:[%s588_s21 + $0x60] sm:$0xff] }
  0x1d   : > { %v321_v19 = vsel %vm289_vm1, %v190_v12, 0.0  ;;  %v322_v24 = vsel %vm290_vm2, %v191_v15, 0.0  ;;  %vm292_vm4 = vcmp.lt.s32.totalorder %v260_v17, 512  ;;  %v323_v29 = vsel %vm291_vm3, %v192_v20, 0.0 }
  0x1e   : > { %v353_v23 = vadd.f32 %v321_v19, %v320_v18  ;;  %v232_v31 = vadd.s32 72, %v591_v2  ;;  %v263_v32 = vadd.s32 %v595_v4, %v230_v21  ;;  %vm293_vm5 = vcmp.lt.s32.totalorder %v261_v22, 512 }
  0x1f   : > { %v324_v34 = vsel %vm292_vm4, %v193_v25, 0.0  ;;  %v393_v35 = vmul.f32 %v320_v18, %v320_v18  ;;  %v394_v36 = vmul.f32 %v321_v19, %v321_v19  ;;  %v233_v38 = vadd.s32 80, %v591_v2 }
  0x20   : > { %v354_v28 = vadd.f32 %v353_v23, %v322_v24  ;;  %v264_v39 = vadd.s32 %v595_v4, %v231_v26  ;;  %vm294_vm6 = vcmp.lt.s32.totalorder %v262_v27, 512  ;;  %v325_v41 = vsel %vm293_vm5, %v194_v30, 0.0  ;;  %v202_v23 = vld [vmem:[%s588_s21 + $0x68] sm:$0xff]  ;;  %v203_v30 = vld [vmem:[%s588_s21 + $0x70] sm:$0xff] }
  0x21   : > { %v395_v42 = vmul.f32 %v322_v24, %v322_v24  ;;  %v234_v44 = vadd.s32 88, %v591_v2  ;;  %v265_v45 = vadd.s32 %v595_v4, %v232_v31  ;;  %vm295_vm7 = vcmp.lt.s32.totalorder %v263_v32, 512 }
  0x22   : > { %v355_v33 = vadd.f32 %v354_v28, %v323_v29  ;;  %v326_v47 = vsel %vm294_vm6, %v195_v37, 0.0  ;;  %v396_v48 = vmul.f32 %v323_v29, %v323_v29  ;;  %v425_v49 = vadd.f32 %v394_v36, %v393_v35  ;;  %v204_v37 = vld [vmem:[%s588_s21 + $0x78] sm:$0xff] }
  0x23   : > { %v235_v51 = vadd.s32 96, %v591_v2  ;;  %v266_v52 = vadd.s32 %v595_v4, %v233_v38  ;;  %vm296_vm8 = vcmp.lt.s32.totalorder %v264_v39, 512  ;;  %v327_v54 = vsel %vm295_vm7, %v196_v43, 0.0 }
  0x24   : > { %v356_v40 = vadd.f32 %v355_v33, %v324_v34  ;;  %v397_v55 = vmul.f32 %v324_v34, %v324_v34  ;;  %v426_v56 = vadd.f32 %v425_v49, %v395_v42  ;;  %v236_v58 = vadd.s32 104, %v591_v2 }
  0x25   : > { %v267_v59 = vadd.s32 %v595_v4, %v234_v44  ;;  %vm297_vm9 = vcmp.lt.s32.totalorder %v265_v45, 512  ;;  %v328_v61 = vsel %vm296_vm8, %v197_v50, 0.0  ;;  %v398_v62 = vmul.f32 %v325_v41, %v325_v41  ;;  %v205_v44 = vld [vmem:[%s588_s21 + $0x80] sm:$0xff] }
  0x26   : > { %v357_v46 = vadd.f32 %v356_v40, %v325_v41  ;;  %v427_v63 = vadd.f32 %v426_v56, %v396_v48  ;;  %v237_v1 = vadd.s32 112, %v591_v2  ;;  %v268_v3 = vadd.s32 %v595_v4, %v235_v51  ;;  %v206_v51 = vld [vmem:[%s588_s21 + $0x88] sm:$0xff] }
  0x27   : > { %vm298_vm10 = vcmp.lt.s32.totalorder %v266_v52, 512  ;;  %v329_v6 = vsel %vm297_vm9, %v198_v57, 0.0  ;;  %v399_v7 = vmul.f32 %v326_v47, %v326_v47  ;;  %v238_v10 = vadd.s32 120, %v591_v2 }
  0x28   : > { %v358_v53 = vadd.f32 %v357_v46, %v326_v47  ;;  %v428_v8 = vadd.f32 %v427_v63, %v397_v55  ;;  %v269_v11 = vadd.s32 %v595_v4, %v236_v58  ;;  %vm299_vm11 = vcmp.lt.s32.totalorder %v267_v59, 512  ;;  %v207_v58 = vld [vmem:[%s588_s21 + $0x90] sm:$0xff] }
  0x29   : > { %v330_v13 = vsel %vm298_vm10, %v199_v0, 0.0  ;;  %v400_v14 = vmul.f32 %v327_v54, %v327_v54  ;;  %v239_v17 = vadd.s32 128, %v591_v2  ;;  %v270_v18 = vadd.s32 %v595_v4, %v237_v1  ;;  %v208_v1 = vld [vmem:[%s588_s21 + $0x98] sm:$0xff] }
  0x2a   : > { %v359_v60 = vadd.f32 %v358_v53, %v327_v54  ;;  %v429_v15 = vadd.f32 %v428_v8, %v398_v62  ;;  %vm300_vm12 = vcmp.lt.s32.totalorder %v268_v3, 512  ;;  %v331_v20 = vsel %vm299_vm11, %v200_v9, 0.0 }
  0x2b   : > { %v401_v21 = vmul.f32 %v328_v61, %v328_v61  ;;  %v240_v24 = vadd.s32 136, %v591_v2  ;;  %v271_v25 = vadd.s32 %v595_v4, %v238_v10  ;;  %vm301_vm13 = vcmp.lt.s32.totalorder %v269_v11, 512  ;;  %v209_v10 = vld [vmem:[%s588_s21 + $0xa0] sm:$0xff] }
  0x2c   : > { %v360_v5 = vadd.f32 %v359_v60, %v328_v61  ;;  %v430_v22 = vadd.f32 %v429_v15, %v399_v7  ;;  %v332_v27 = vsel %vm300_vm12, %v201_v16, 0.0  ;;  %v402_v28 = vmul.f32 %v329_v6, %v329_v6 }
  0x2d   : > { %v241_v31 = vadd.s32 144, %v591_v2  ;;  %v272_v32 = vadd.s32 %v595_v4, %v239_v17  ;;  %vm302_vm14 = vcmp.lt.s32.totalorder %v270_v18, 512  ;;  %v333_v34 = vsel %vm301_vm13, %v202_v23, 0.0  ;;  %v210_v17 = vld [vmem:[%s588_s21 + $0xa8] sm:$0xff] }
  0x2e   : > { %v361_v12 = vadd.f32 %v360_v5, %v329_v6  ;;  %v431_v29 = vadd.f32 %v430_v22, %v400_v14  ;;  %v403_v35 = vmul.f32 %v330_v13, %v330_v13  ;;  %v242_v38 = vadd.s32 152, %v591_v2 }
  0x2f   : > { %v273_v39 = vadd.s32 %v595_v4, %v240_v24  ;;  %vm303_vm15 = vcmp.lt.s32.totalorder %v271_v25, 512  ;;  %v334_v41 = vsel %vm302_vm14, %v203_v30, 0.0  ;;  %v404_v42 = vmul.f32 %v331_v20, %v331_v20  ;;  %v211_v24 = vld [vmem:[%s588_s21 + $0xb0] sm:$0xff] }
  0x30   : > { %v362_v19 = vadd.f32 %v361_v12, %v330_v13  ;;  %v432_v36 = vadd.f32 %v431_v29, %v401_v21  ;;  %v243_v45 = vadd.s32 160, %v591_v2  ;;  %v274_v46 = vadd.s32 %v595_v4, %v241_v31  ;;  %v212_v31 = vld [vmem:[%s588_s21 + $0xb8] sm:$0xff] }
  0x31   : > { %vm304_vm0 = vcmp.lt.s32.totalorder %v272_v32, 512  ;;  %v335_v48 = vsel %vm303_vm15, %v204_v37, 0.0  ;;  %v405_v49 = vmul.f32 %v332_v27, %v332_v27  ;;  %v244_v52 = vadd.s32 168, %v591_v2 }
  0x32   : > { %v363_v26 = vadd.f32 %v362_v19, %v331_v20  ;;  %v433_v43 = vadd.f32 %v432_v36, %v402_v28  ;;  %v275_v53 = vadd.s32 %v595_v4, %v242_v38  ;;  %vm305_vm1 = vcmp.lt.s32.totalorder %v273_v39, 512  ;;  %v213_v38 = vld [vmem:[%s588_s21 + $0xc0] sm:$0xff] }
  0x33   : > { %v336_v55 = vsel %vm304_vm0, %v205_v44, 0.0  ;;  %v406_v56 = vmul.f32 %v333_v34, %v333_v34  ;;  %v245_v59 = vadd.s32 176, %v591_v2  ;;  %v276_v60 = vadd.s32 %v595_v4, %v243_v45  ;;  %v214_v45 = vld [vmem:[%s588_s21 + $0xc8] sm:$0xff] }
  0x34   : > { %v364_v33 = vadd.f32 %v363_v26, %v332_v27  ;;  %v434_v50 = vadd.f32 %v433_v43, %v403_v35  ;;  %vm306_vm2 = vcmp.lt.s32.totalorder %v274_v46, 512  ;;  %v337_v62 = vsel %vm305_vm1, %v206_v51, 0.0 }
  0x35   : > { %v407_v63 = vmul.f32 %v334_v41, %v334_v41  ;;  %v246_v3 = vadd.s32 184, %v591_v2  ;;  %v277_v5 = vadd.s32 %v595_v4, %v244_v52  ;;  %vm307_vm3 = vcmp.lt.s32.totalorder %v275_v53, 512  ;;  %v215_v52 = vld [vmem:[%s588_s21 + $0xd0] sm:$0xff] }
  0x36   : > { %v365_v40 = vadd.f32 %v364_v33, %v333_v34  ;;  %v435_v57 = vadd.f32 %v434_v50, %v404_v42  ;;  %v338_v7 = vsel %vm306_vm2, %v207_v58, 0.0  ;;  %v408_v8 = vmul.f32 %v335_v48, %v335_v48 }
  0x37   : > { %v247_v11 = vadd.s32 192, %v591_v2  ;;  %v278_v12 = vadd.s32 %v595_v4, %v245_v59  ;;  %vm308_vm4 = vcmp.lt.s32.totalorder %v276_v60, 512  ;;  %v339_v14 = vsel %vm307_vm3, %v208_v1, 0.0  ;;  %v216_v59 = vld [vmem:[%s588_s21 + $0xd8] sm:$0xff] }
  0x38   : > { %v366_v47 = vadd.f32 %v365_v40, %v334_v41  ;;  %v436_v0 = vadd.f32 %v435_v57, %v405_v49  ;;  %v409_v15 = vmul.f32 %v336_v55, %v336_v55  ;;  %v248_v18 = vadd.s32 200, %v591_v2 }
  0x39   : > { %v279_v19 = vadd.s32 %v595_v4, %v246_v3  ;;  %vm309_vm5 = vcmp.lt.s32.totalorder %v277_v5, 512  ;;  %v340_v21 = vsel %vm308_vm4, %v209_v10, 0.0  ;;  %v410_v22 = vmul.f32 %v337_v62, %v337_v62  ;;  %v217_v3 = vld [vmem:[%s588_s21 + $0xe0] sm:$0xff]  ;;  %v218_v10 = vld [vmem:[%s588_s21 + $0xe8] sm:$0xff] }
  0x3a   : > { %v367_v54 = vadd.f32 %v366_v47, %v335_v48  ;;  %v437_v9 = vadd.f32 %v436_v0, %v406_v56  ;;  %v249_v25 = vadd.s32 208, %v591_v2  ;;  %v280_v26 = vadd.s32 %v595_v4, %v247_v11 }
  0x3b   : > { %vm310_vm6 = vcmp.lt.s32.totalorder %v278_v12, 512  ;;  %v341_v28 = vsel %vm309_vm5, %v210_v17, 0.0  ;;  %v411_v29 = vmul.f32 %v338_v7, %v338_v7  ;;  %v250_v32 = vadd.s32 216, %v591_v2 }
  0x3c   : > { %v368_v61 = vadd.f32 %v367_v54, %v336_v55  ;;  %v438_v16 = vadd.f32 %v437_v9, %v407_v63  ;;  %v281_v33 = vadd.s32 %v595_v4, %v248_v18  ;;  %vm311_vm7 = vcmp.lt.s32.totalorder %v279_v19, 512 }
  0x3d   : > { %v342_v35 = vsel %vm310_vm6, %v211_v24, 0.0  ;;  %v412_v36 = vmul.f32 %v339_v14, %v339_v14  ;;  %v251_v39 = vadd.s32 224, %v591_v2  ;;  %v282_v40 = vadd.s32 %v595_v4, %v249_v25 }
  0x3e   : > { %v369_v6 = vadd.f32 %v368_v61, %v337_v62  ;;  %v439_v23 = vadd.f32 %v438_v16, %v408_v8  ;;  %vm312_vm8 = vcmp.lt.s32.totalorder %v280_v26, 512  ;;  %v343_v42 = vsel %vm311_vm7, %v212_v31, 0.0 }
  0x3f   : > { %v413_v43 = vmul.f32 %v340_v21, %v340_v21  ;;  %v252_v46 = vadd.s32 232, %v591_v2  ;;  %v283_v47 = vadd.s32 %v595_v4, %v250_v32  ;;  %vm313_vm9 = vcmp.lt.s32.totalorder %v281_v33, 512 }
  0x40   : > { %v370_v13 = vadd.f32 %v369_v6, %v338_v7  ;;  %v440_v30 = vadd.f32 %v439_v23, %v409_v15  ;;  %v344_v49 = vsel %vm312_vm8, %v213_v38, 0.0  ;;  %v414_v50 = vmul.f32 %v341_v28, %v341_v28  ;;  %v219_v15 = vld [vmem:[%s588_s21 + $0xf0] sm:$0xff] }
  0x41   : > { %v253_v53 = vadd.s32 240, %v591_v2  ;;  %v284_v54 = vadd.s32 %v595_v4, %v251_v39  ;;  %vm314_vm10 = vcmp.lt.s32.totalorder %v282_v40, 512  ;;  %v345_v56 = vsel %vm313_vm9, %v214_v45, 0.0 }
  0x42   : > { %v371_v20 = vadd.f32 %v370_v13, %v339_v14  ;;  %v441_v37 = vadd.f32 %v440_v30, %v410_v22  ;;  %v415_v57 = vmul.f32 %v342_v35, %v342_v35  ;;  %v254_v60 = vadd.s32 248, %v591_v2 }
  0x43   : > { %v285_v61 = vadd.s32 %v595_v4, %v252_v46  ;;  %vm315_vm11 = vcmp.lt.s32.totalorder %v283_v47, 512  ;;  %v346_v63 = vsel %vm314_vm10, %v215_v52, 0.0  ;;  %v416_v0 = vmul.f32 %v343_v42, %v343_v42 }
  0x44   : > { %v372_v27 = vadd.f32 %v371_v20, %v340_v21  ;;  %v442_v44 = vadd.f32 %v441_v37, %v411_v29  ;;  %v286_v5 = vadd.s32 %v595_v4, %v253_v53  ;;  %vm316_vm12 = vcmp.lt.s32.totalorder %v284_v54, 512  ;;  %v220_v20 = vld [vmem:[%s588_s21 + $0xf8] sm:$0xff] }
  0x45   : > { %v347_v7 = vsel %vm315_vm11, %v216_v59, 0.0  ;;  %v417_v8 = vmul.f32 %v344_v49, %v344_v49  ;;  %v287_v2 = vadd.s32 %v595_v4, %v254_v60  ;;  %vm317_vm13 = vcmp.lt.s32.totalorder %v285_v61, 512  ;;  %v475_v61 = vld [vmem:[%s709_s1] sm:$0x1] (!%p526_p5) }
  0x46   : > { %v373_v34 = vadd.f32 %v372_v27, %v341_v28  ;;  %v443_v51 = vadd.f32 %v442_v44, %v412_v36  ;;  %v348_v12 = vsel %vm316_vm12, %v217_v3, 0.0  ;;  %v418_v13 = vmul.f32 %v345_v56, %v345_v56 }
  0x47   : > { %vm318_vm14 = vcmp.lt.s32.totalorder %v286_v5, 512  ;;  %v349_v17 = vsel %vm317_vm13, %v218_v10, 0.0  ;;  %v419_v18 = vmul.f32 %v346_v63, %v346_v63  ;;  %vm319_vm15 = vcmp.lt.s32.totalorder %v287_v2, 512 }
  0x48   : > { %v374_v41 = vadd.f32 %v373_v34, %v342_v35  ;;  %v444_v58 = vadd.f32 %v443_v51, %v413_v43  ;;  %v350_v22 = vsel %vm318_vm14, %v219_v15, 0.0  ;;  %v420_v23 = vmul.f32 %v347_v7, %v347_v7 }
  0x49   : > { %v351_v26 = vsel %vm319_vm15, %v220_v20, 0.0  ;;  %v421_v4 = vmul.f32 %v348_v12, %v348_v12  ;;  %v422_v29 = vmul.f32 %v349_v17, %v349_v17  ;;  %v423_v32 = vmul.f32 %v350_v22, %v350_v22 }
  0x4a   : > { %v375_v48 = vadd.f32 %v374_v41, %v343_v42  ;;  %v445_v1 = vadd.f32 %v444_v58, %v414_v50  ;;  %v424_v35 = vmul.f32 %v351_v26, %v351_v26  ;;  %v352_v42 = vld [vmem:[#allocation2] sm:$0x1]  ;;  %v392_v50 = vld [vmem:[#allocation3] sm:$0x1] }
  0x4c   : > { %v376_v55 = vadd.f32 %v375_v48, %v344_v49  ;;  %v446_v9 = vadd.f32 %v445_v1, %v415_v57 }
  0x4e   : > { %v377_v62 = vadd.f32 %v376_v55, %v345_v56  ;;  %v447_v14 = vadd.f32 %v446_v9, %v416_v0  ;;  %v480_v0 = vld [vmem:[%s710_s2] sm:$0x1] (!%p526_p5) }
  0x50   : > { %v378_v6 = vadd.f32 %v377_v62, %v346_v63  ;;  %v448_v19 = vadd.f32 %v447_v14, %v417_v8 }
  0x52   : > { %v379_v11 = vadd.f32 %v378_v6, %v347_v7  ;;  %v449_v24 = vadd.f32 %v448_v19, %v418_v13 }
  0x54   : > { %v380_v16 = vadd.f32 %v379_v11, %v348_v12  ;;  %v450_v27 = vadd.f32 %v449_v24, %v419_v18 }
  0x56   : > { %v381_v21 = vadd.f32 %v380_v16, %v349_v17  ;;  %v451_v30 = vadd.f32 %v450_v27, %v420_v23 }
  0x58   : > { %v382_v25 = vadd.f32 %v381_v21, %v350_v22  ;;  %v452_v33 = vadd.f32 %v451_v30, %v421_v4 }
  0x5a   : > { %v383_v28 = vadd.f32 %v382_v25, %v351_v26  ;;  %v453_v36 = vadd.f32 %v452_v33, %v422_v29 }
  0x5c   : > { %v384_v31 = vrot.slane %v383_v28, 4  ;;  %v454_v38 = vadd.f32 %v453_v36, %v423_v32 }
  0x5e   : > { %v385_v34 = vadd.f32 %v384_v31, %v383_v28  ;;  %v455_v40 = vadd.f32 %v454_v38, %v424_v35 }
  0x60   : > { %v386_v37 = vrot.slane %v385_v34, 2  ;;  %v456_v43 = vrot.slane %v455_v40, 4 }
  0x62   : > { %v387_v39 = vadd.f32 %v386_v37, %v385_v34  ;;  %v457_v45 = vadd.f32 %v456_v43, %v455_v40 }
  0x64   : > { %v388_v41 = vrot.slane %v387_v39, 1  ;;  %v458_v47 = vrot.slane %v457_v45, 2 }
  0x66   : > { %v389_v44 = vadd.f32 %v388_v41, %v387_v39  ;;  %v459_v48 = vadd.f32 %v458_v47, %v457_v45 }
  0x68   : > { %v390_v46 = vadd.f32 %v389_v44, %v352_v42  ;;  %v460_v49 = vrot.slane %v459_v48, 1  ;;  %467 = sbr.rel (%p526_p5) target bundleno = 144 (0x90), region = 40 }
  0x6a   : > { %391 = vst [vmem:[#allocation2] sm:$0x1] %v390_v46  ;;  %v461_v51 = vadd.f32 %v460_v49, %v459_v48 }
  0x6c   : > { %v462_v52 = vadd.f32 %v461_v51, %v392_v50 }
  0x6e   : > { %463 = vst [vmem:[#allocation3] sm:$0x1] %v462_v52 }
  0x71   : > { %v468_v53 = vld [vmem:[#allocation2] sm:$0x1] }
  0x72   : > { %v469_v55 = vmul.f32 0.001953125, %v468_v53 }
  0x74   : > { %v472_v57 = vmul.f32 %v469_v55, %v469_v55 }
  0x75   : > { %v470_v54 = vld [vmem:[#allocation3] sm:$0x1] }
  0x76   : > { %v471_v56 = vmul.f32 0.001953125, %v470_v54 }
  0x78   : > { %v473_v58 = vsub.f32 %v471_v56, %v472_v57 }
  0x7a   : > { %v474_v59 = vmax.f32 %v473_v58, 0.0 }
  0x7c   : > { %v476_v60 = vadd.f32 1e-05, %v474_v59 }
  0x7e   : > { %538 = vrsqrt.f32 %v476_v60 }
  0x88   : > { %v539_v62 = vpop.eup %538 }
  0x89   : > { %v478_v63 = vmul.f32 %v539_v62, %v475_v61 }
  0x8b   : > { %479 = vst [vmem:[%s711_s3] sm:$0x1] %v478_v63  ;;  %v481_v1 = vmul.f32 %v478_v63, %v469_v55 }
  0x8d   : > { %v482_v3 = vsub.f32 %v480_v0, %v481_v1 }
  0x8f   : > { %483 = vst [vmem:[%s712_s4] sm:$0x1] %v482_v3 }
  0x90 PF: > { %s15_s15 = sadd.s32 1, %s546_s15  }
  0x91   : > { %p12_p6 = scmp.ge.s32.totalorder %s15_s15, 4  }
  0x93   :  { %14 = sbr.rel (!%p12_p6) target bundleno = 1 (0x1), region = 74 }

// kernel: a_call__.3
= control target key start
LH: loop header
LB: loop body
LE: loop exit
PB: predicated region body
PF: predicated region fallthrough
CT: control target
= control target key end

     0   :  { %s421_s12 = smov 0   ;;  %s580_s0 = inlined_call_operand.vmem [shape: f32[512,128], index: 0, kind: input, shape index: {}]   ;;  %s581_s1 = inlined_call_operand.vmem [shape: f32[1,128], index: 1, kind: input, shape index: {}]   ;;  %s582_s2 = inlined_call_operand.vmem [shape: f32[1,128], index: 2, kind: input, shape index: {}]   ;;  %s583_s3 = inlined_call_operand.vmem [shape: f32[512,128], index: 3, kind: output, shape index: {}]  }
   0x1 LB: > { %s372_s13 = sadd.s32 4294967295, %s399_s12   ;;  %p376_p0 = scmp.ge.s32.totalorder %s399_s12, 1  ;;  %s399_s12 = sphi %s421_s12, %s13_s12  }
   0x2   : > { %p138_p1 = scmp.lt.s32.totalorder %s399_s12, 3 }
   0x4   : > { %p139_p2 = pnand %p376_p0, %p138_p1 }
   0x5   : > { %s377_s14 = sshll.u32 (!%p139_p2), %s372_s13, 5  ;;  %v432_v0 = vld [vmem:[%s581_s1] ss:$0 sm:$0xff] (!%p139_p2) }
   0x6   : > { %142 = sbr.rel (%p139_p2) target bundleno = 40 (0x28), region = 32  ;;  %p163_p3 = scmp.lt.s32.totalorder (!%p139_p2), %s377_s14, 63  ;;  %v442_v1 = vld [vmem:[%s582_s2] ss:$0 sm:$0xff] (!%p139_p2) }
   0xd   : > { %s585_s14 = smov (!%p163_p3, %s377_s14), 63 }
   0xe   : > { %s378_s15 = sshll.u32 %s585_s14, 3 }
   0xf   : > { %s437_s20 = scalar_lea.vmem %s580_s0, %s378_s15  ;;  %s456_s25 = scalar_lea.vmem %s583_s3, %s378_s15 }
  0x10   : > { %v174_v2 = vld [vmem:[%s437_s20] sm:$0xff]  ;;  %v175_v3 = vld [vmem:[%s437_s20 + $0x8] sm:$0xff]  ;;  %v176_v4 = vld [vmem:[%s437_s20 + $0x10] sm:$0xff] }
  0x11   : > { %v213_v5 = vmul.f32 %v432_v0, %v174_v2  ;;  %v214_v6 = vmul.f32 %v432_v0, %v175_v3  ;;  %v215_v7 = vmul.f32 %v432_v0, %v176_v4  ;;  %v177_v8 = vld [vmem:[%s437_s20 + $0x18] sm:$0xff]  ;;  %v178_v9 = vld [vmem:[%s437_s20 + $0x20] sm:$0xff]  ;;  %v179_v10 = vld [vmem:[%s437_s20 + $0x28] sm:$0xff] }
  0x12   : > { %v216_v11 = vmul.f32 %v432_v0, %v177_v8  ;;  %v217_v12 = vmul.f32 %v432_v0, %v178_v9  ;;  %v218_v13 = vmul.f32 %v432_v0, %v179_v10  ;;  %v180_v14 = vld [vmem:[%s437_s20 + $0x30] sm:$0xff]  ;;  %v181_v15 = vld [vmem:[%s437_s20 + $0x38] sm:$0xff]  ;;  %v182_v16 = vld [vmem:[%s437_s20 + $0x40] sm:$0xff] }
  0x13   : > { %v252_v17 = vadd.f32 %v442_v1, %v213_v5  ;;  %v253_v18 = vadd.f32 %v442_v1, %v214_v6  ;;  %v254_v19 = vadd.f32 %v442_v1, %v215_v7  ;;  %v219_v20 = vmul.f32 %v432_v0, %v180_v14  ;;  %v183_v21 = vld [vmem:[%s437_s20 + $0x48] sm:$0xff]  ;;  %v184_v22 = vld [vmem:[%s437_s20 + $0x50] sm:$0xff]  ;;  %v185_v23 = vld [vmem:[%s437_s20 + $0x58] sm:$0xff] }
  0x14   : > { %v255_v24 = vadd.f32 %v442_v1, %v216_v11  ;;  %v256_v25 = vadd.f32 %v442_v1, %v217_v12  ;;  %v257_v26 = vadd.f32 %v442_v1, %v218_v13  ;;  %v220_v27 = vmul.f32 %v432_v0, %v181_v15  ;;  %v186_v28 = vld [vmem:[%s437_s20 + $0x60] sm:$0xff]  ;;  %v187_v29 = vld [vmem:[%s437_s20 + $0x68] sm:$0xff]  ;;  %v188_v30 = vld [vmem:[%s437_s20 + $0x70] sm:$0xff] }
  0x15   : > { %284 = vst [vmem:[%s456_s25] sm:$0xff] %v252_v17  ;;  %285 = vst [vmem:[%s456_s25 + $0x8] sm:$0xff] %v253_v18  ;;  %v258_v31 = vadd.f32 %v442_v1, %v219_v20  ;;  %v221_v32 = vmul.f32 %v432_v0, %v182_v16  ;;  %v222_v33 = vmul.f32 %v432_v0, %v183_v21  ;;  %v189_v35 = vld [vmem:[%s437_s20 + $0x78] sm:$0xff]  ;;  %v190_v40 = vld [vmem:[%s437_s20 + $0x80] sm:$0xff] }
  0x16   : > { %286 = vst [vmem:[%s456_s25 + $0x10] sm:$0xff] %v254_v19  ;;  %v223_v34 = vmul.f32 %v432_v0, %v184_v22  ;;  %287 = vst [vmem:[%s456_s25 + $0x18] sm:$0xff] %v255_v24  ;;  %v259_v36 = vadd.f32 %v442_v1, %v220_v27  ;;  %v224_v37 = vmul.f32 %v432_v0, %v185_v23  ;;  %v191_v41 = vld [vmem:[%s437_s20 + $0x88] sm:$0xff]  ;;  %v192_v42 = vld [vmem:[%s437_s20 + $0x90] sm:$0xff] }
  0x17   : > { %288 = vst [vmem:[%s456_s25 + $0x20] sm:$0xff] %v256_v25  ;;  %289 = vst [vmem:[%s456_s25 + $0x28] sm:$0xff] %v257_v26  ;;  %v225_v38 = vmul.f32 %v432_v0, %v186_v28  ;;  %v226_v39 = vmul.f32 %v432_v0, %v187_v29  ;;  %v260_v43 = vadd.f32 %v442_v1, %v221_v32  ;;  %v193_v47 = vld [vmem:[%s437_s20 + $0x98] sm:$0xff]  ;;  %v194_v48 = vld [vmem:[%s437_s20 + $0xa0] sm:$0xff] }
  0x18   : > { %290 = vst [vmem:[%s456_s25 + $0x30] sm:$0xff] %v258_v31  ;;  %v261_v44 = vadd.f32 %v442_v1, %v222_v33  ;;  %v262_v45 = vadd.f32 %v442_v1, %v223_v34  ;;  %v227_v46 = vmul.f32 %v432_v0, %v188_v30  ;;  %v195_v49 = vld [vmem:[%s437_s20 + $0xa8] sm:$0xff]  ;;  %291 = vst [vmem:[%s456_s25 + $0x38] sm:$0xff] %v259_v36  ;;  %v196_v54 = vld [vmem:[%s437_s20 + $0xb0] sm:$0xff] }
  0x19   : > { %v263_v50 = vadd.f32 %v442_v1, %v224_v37  ;;  %v264_v51 = vadd.f32 %v442_v1, %v225_v38  ;;  %v265_v52 = vadd.f32 %v442_v1, %v226_v39  ;;  %v228_v53 = vmul.f32 %v432_v0, %v189_v35  ;;  %292 = vst [vmem:[%s456_s25 + $0x40] sm:$0xff] %v260_v43  ;;  %v197_v59 = vld [vmem:[%s437_s20 + $0xb8] sm:$0xff]  ;;  %v198_v2 = vld [vmem:[%s437_s20 + $0xc0] sm:$0xff]  ;;  %v199_v3 = vld [vmem:[%s437_s20 + $0xc8] sm:$0xff] }
  0x1a   : > { %293 = vst [vmem:[%s456_s25 + $0x48] sm:$0xff] %v261_v44  ;;  %294 = vst [vmem:[%s456_s25 + $0x50] sm:$0xff] %v262_v45  ;;  %v266_v55 = vadd.f32 %v442_v1, %v227_v46  ;;  %v229_v56 = vmul.f32 %v432_v0, %v190_v40  ;;  %v230_v57 = vmul.f32 %v432_v0, %v191_v41  ;;  %v200_v4 = vld [vmem:[%s437_s20 + $0xd0] sm:$0xff]  ;;  %v201_v9 = vld [vmem:[%s437_s20 + $0xd8] sm:$0xff] }
  0x1b   : > { %v231_v58 = vmul.f32 %v432_v0, %v192_v42  ;;  %295 = vst [vmem:[%s456_s25 + $0x58] sm:$0xff] %v263_v50  ;;  %296 = vst [vmem:[%s456_s25 + $0x60] sm:$0xff] %v264_v51  ;;  %v267_v60 = vadd.f32 %v442_v1, %v228_v53  ;;  %v232_v61 = vmul.f32 %v432_v0, %v193_v47  ;;  %v202_v10 = vld [vmem:[%s437_s20 + $0xe0] sm:$0xff]  ;;  %v203_v11 = vld [vmem:[%s437_s20 + $0xe8] sm:$0xff] }
  0x1c   : > { %297 = vst [vmem:[%s456_s25 + $0x68] sm:$0xff] %v265_v52  ;;  %v233_v62 = vmul.f32 %v432_v0, %v194_v48  ;;  %v234_v63 = vmul.f32 %v432_v0, %v195_v49  ;;  %298 = vst [vmem:[%s456_s25 + $0x70] sm:$0xff] %v266_v55  ;;  %v268_v5 = vadd.f32 %v442_v1, %v229_v56  ;;  %v204_v16 = vld [vmem:[%s437_s20 + $0xf0] sm:$0xff]  ;;  %v205_v21 = vld [vmem:[%s437_s20 + $0xf8] sm:$0xff] }
  0x1d   : > { %v269_v6 = vadd.f32 %v442_v1, %v230_v57  ;;  %v270_v7 = vadd.f32 %v442_v1, %v231_v58  ;;  %v235_v8 = vmul.f32 %v432_v0, %v196_v54  ;;  %299 = vst [vmem:[%s456_s25 + $0x78] sm:$0xff] %v267_v60  ;;  %v271_v12 = vadd.f32 %v442_v1, %v232_v61 }
  0x1e   : > { %v272_v13 = vadd.f32 %v442_v1, %v233_v62  ;;  %v273_v14 = vadd.f32 %v442_v1, %v234_v63  ;;  %v236_v15 = vmul.f32 %v432_v0, %v197_v59  ;;  %300 = vst [vmem:[%s456_s25 + $0x80] sm:$0xff] %v268_v5  ;;  %v237_v18 = vmul.f32 %v432_v0, %v198_v2 }
  0x1f   : > { %301 = vst [vmem:[%s456_s25 + $0x88] sm:$0xff] %v269_v6  ;;  %302 = vst [vmem:[%s456_s25 + $0x90] sm:$0xff] %v270_v7  ;;  %v274_v17 = vadd.f32 %v442_v1, %v235_v8  ;;  %v238_v19 = vmul.f32 %v432_v0, %v199_v3  ;;  %v239_v20 = vmul.f32 %v432_v0, %v200_v4 }
  0x20   : > { %303 = vst [vmem:[%s456_s25 + $0x98] sm:$0xff] %v271_v12  ;;  %304 = vst [vmem:[%s456_s25 + $0xa0] sm:$0xff] %v272_v13  ;;  %v275_v22 = vadd.f32 %v442_v1, %v236_v15  ;;  %v240_v23 = vmul.f32 %v432_v0, %v201_v9  ;;  %v241_v24 = vmul.f32 %v432_v0, %v202_v10 }
  0x21   : > { %305 = vst [vmem:[%s456_s25 + $0xa8] sm:$0xff] %v273_v14  ;;  %v242_v25 = vmul.f32 %v432_v0, %v203_v11  ;;  %306 = vst [vmem:[%s456_s25 + $0xb0] sm:$0xff] %v274_v17  ;;  %v276_v26 = vadd.f32 %v442_v1, %v237_v18  ;;  %v277_v27 = vadd.f32 %v442_v1, %v238_v19 }
  0x22   : > { %v278_v28 = vadd.f32 %v442_v1, %v239_v20  ;;  %v243_v29 = vmul.f32 %v432_v0, %v204_v16  ;;  %307 = vst [vmem:[%s456_s25 + $0xb8] sm:$0xff] %v275_v22  ;;  %v279_v30 = vadd.f32 %v442_v1, %v240_v23  ;;  %v280_v31 = vadd.f32 %v442_v1, %v241_v24 }
  0x23   : > { %v281_v32 = vadd.f32 %v442_v1, %v242_v25  ;;  %v244_v33 = vmul.f32 %v432_v0, %v205_v21  ;;  %308 = vst [vmem:[%s456_s25 + $0xc0] sm:$0xff] %v276_v26  ;;  %309 = vst [vmem:[%s456_s25 + $0xc8] sm:$0xff] %v277_v27 }
  0x24   : > { %310 = vst [vmem:[%s456_s25 + $0xd0] sm:$0xff] %v278_v28  ;;  %v282_v34 = vadd.f32 %v442_v1, %v243_v29  ;;  %311 = vst [vmem:[%s456_s25 + $0xd8] sm:$0xff] %v279_v30 }
  0x25   : > { %312 = vst [vmem:[%s456_s25 + $0xe0] sm:$0xff] %v280_v31  ;;  %313 = vst [vmem:[%s456_s25 + $0xe8] sm:$0xff] %v281_v32  ;;  %v283_v35 = vadd.f32 %v442_v1, %v244_v33 }
  0x26   : > { %314 = vst [vmem:[%s456_s25 + $0xf0] sm:$0xff] %v282_v34 }
  0x27   : > { %315 = vst [vmem:[%s456_s25 + $0xf8] sm:$0xff] %v283_v35 }
  0x28 PF: > { %s13_s12 = sadd.s32 1, %s399_s12  }
  0x29   : > { %p10_p4 = scmp.ge.s32.totalorder %s13_s12, 4  }
  0x2b   :  { %12 = sbr.rel (!%p10_p4) target bundleno = 1 (0x1), region = 62 }

</bundles_post_ra>
